<compile_context>
chip_gen: v6e
topology: v6e:2x2x1
jax: 0.10.0
libtpu: 0.0.40
codegen_flags: <defaults>
</compile_context>

<pallas_src>
import functools

import jax
import jax.numpy as jnp
from jax.experimental import pallas as pl
from jax.experimental.pallas import tpu as pltpu


# ----------------------------- kernels --------------------------------------


def _mean_pool_kernel(x_ref, o_ref, acc_ref, *, true_s, ts, needs_mask):
    """Tiled mean over the sequence axis with an f32 accumulator.

    x_ref:   (TB, TS, D) input tile (VMEM)
    o_ref:   (TB, D) output tile (resident across the sequence grid axis)
    acc_ref: (TB, D) f32 scratch accumulator
    """
    si = pl.program_id(1)
    last = pl.num_programs(1) - 1

    @pl.when(si == 0)
    def _():
        acc_ref[...] = jnp.zeros_like(acc_ref)

    if needs_mask:
        # Only the final sequence tile is ragged. Keep the steady state a bare
        # unmasked sum; on the last step statically slice the valid rows so the
        # padded region of the overrun tile is never read (no iota/where work).
        rem = true_s % ts  # static number of valid rows in the last tile

        @pl.when(si != last)
        def _():
            acc_ref[...] += jnp.sum(x_ref[...].astype(jnp.float32), axis=1)

        @pl.when(si == last)
        def _():
            acc_ref[...] += jnp.sum(x_ref[:, :rem, :].astype(jnp.float32), axis=1)
    else:
        acc_ref[...] += jnp.sum(x_ref[...].astype(jnp.float32), axis=1)

    @pl.when(si == last)
    def _():
        # Scale by the TRUE sequence length and cast to the output dtype once,
        # at the end of the reduction.
        o_ref[...] = (acc_ref[...] * (1.0 / true_s)).astype(o_ref.dtype)


def _cls_pool_kernel(x_ref, o_ref):
    # x_ref: (TB, D) — the size-1 sequence dim is squeezed in the BlockSpec,
    # so only sequence row 0 is ever DMA'd.
    o_ref[...] = x_ref[...]


# --------------------------- tile selection ----------------------------------


def _sublane_align(itemsize: int) -> int:
    """Packed sublane count per vreg for the given element size."""
    if itemsize >= 4:
        return 8
    if itemsize == 2:
        return 16
    return 32


def _vmem_limit_bytes() -> int:
    """Generation-aware scoped-VMEM limit (~60% of physical, capped)."""
    cap = None
    try:
        info = pltpu.get_tpu_info()
        for attr in ("vmem_capacity_bytes", "vmem_bytes", "vmem_size_bytes"):
            v = getattr(info, attr, None)
            if isinstance(v, int) and v > 0:
                cap = v
                break
    except Exception:
        cap = None
    if cap is None:
        cap = 64 * 1024 * 1024  # conservative: v7x per-TC physical VMEM
    return int(min(cap * 0.6, 100 * 1024 * 1024))


def _cap_for_megacore(tb: int, B: int) -> int:
    """Ensure >= 2 batch blocks when B >= 16 so both v7x TCs get work."""
    if B >= 16:
        return min(tb, max(8, ((B // 2) // 8) * 8))
    return tb


def _choose_mean_tiles(B, S, D, in_itemsize, vmem_limit):
    """Co-derive (TB, TS) from the VMEM budget.

    Bias toward small TB / large TS: the input DMA copies TB strided segments
    of TS*D contiguous bytes, so larger TS means fewer, longer contiguous
    segments and a smaller (TB, D) accumulator. Shrink TB (not TS) if the
    budget is tight for large D.
    """
    sub = _sublane_align(in_itemsize)
    # Budget for the double-buffered input tile; output + scratch use the rest.
    budget = int(vmem_limit * 0.70)

    TB = min(B, 32)
    TB = _cap_for_megacore(TB, B)
    TB = max(1, TB)

    def ts_cap(tb):
        return budget // max(1, 2 * tb * D * in_itemsize)

    # If even a minimally-aligned TS does not fit, shrink TB first.
    while TB > 1 and ts_cap(TB) < sub:
        TB = max(1, TB // 2)

    cap = ts_cap(TB)
    if S <= cap:
        TS = S  # whole sequence per batch tile -> single reduction step
    else:
        TS = max(sub, (cap // sub) * sub)
        TS = min(TS, S)
    TS = max(1, min(TS, S))
    return TB, TS


# ------------------------------ wrapper --------------------------------------


def pooling(x: jax.Array, pool: str = "mean", *, tb=None, ts=None) -> jax.Array:
    """Pallas equivalent of Pooling.forward. x: (B, S, D) -> (B, D)."""
    if pool not in ("mean", "cls"):
        raise ValueError("pool must be one of {mean, cls}")
    B, S, D = x.shape
    in_itemsize = jnp.dtype(x.dtype).itemsize
    vmem_limit = _vmem_limit_bytes()

    if pool == "cls":
        TB = tb if tb is not None else min(B, 256)
        TB = _cap_for_megacore(TB, B)
        nb = pl.cdiv(B, TB)
        return pl.pallas_call(
            _cls_pool_kernel,
            out_shape=jax.ShapeDtypeStruct((B, D), x.dtype),
            grid=(nb,),
            # Size-1 sequence dim squeezed out: kernel sees (TB, D); only the
            # first sequence row of each batch tile is DMA'd.
            in_specs=[pl.BlockSpec((TB, None, D), lambda b: (b, 0, 0))],
            out_specs=pl.BlockSpec((TB, D), lambda b: (b, 0)),
            compiler_params=pltpu.CompilerParams(
                dimension_semantics=("parallel",),
                vmem_limit_bytes=vmem_limit,
            ),
        )(x)

    # mean pooling: tiled reduction over the sequence axis
    auto_tb, auto_ts = _choose_mean_tiles(B, S, D, in_itemsize, vmem_limit)
    TB = tb if tb is not None else auto_tb
    TS = ts if ts is not None else auto_ts
    nb = pl.cdiv(B, TB)
    ns = pl.cdiv(S, TS)
    needs_mask = (S % TS) != 0

    # Make sure the declared scoped-VMEM limit covers the actual footprint
    # (2x double-buffered input + 2x output + f32 accumulator + slack), in case
    # the caller overrides tb/ts.
    footprint = (
        2 * TB * TS * D * in_itemsize
        + 2 * TB * D * in_itemsize
        + TB * D * 4
        + (2 << 20)
    )
    vmem_limit = max(vmem_limit, footprint)

    kernel = functools.partial(
        _mean_pool_kernel, true_s=S, ts=TS, needs_mask=needs_mask
    )
    return pl.pallas_call(
        kernel,
        out_shape=jax.ShapeDtypeStruct((B, D), x.dtype),
        grid=(nb, ns),
        in_specs=[pl.BlockSpec((TB, TS, D), lambda b, s: (b, s, 0))],
        out_specs=pl.BlockSpec((TB, D), lambda b, s: (b, 0)),
        scratch_shapes=[pltpu.VMEM((TB, D), jnp.float32)],
        compiler_params=pltpu.CompilerParams(
            dimension_semantics=("parallel", "arbitrary"),
            vmem_limit_bytes=vmem_limit,
        ),
    )(x)


# ------------------------------- test ----------------------------------------

if __name__ == "__main__":
    key = jax.random.PRNGKey(0)
    B, S, D = 2, 8, 32
    x = jax.random.normal(key, (B, S, D), dtype=jnp.float32)

    # mean pooling (module default)
    out_mean = jax.block_until_ready(pooling(x, pool="mean"))
    ref_mean = jnp.mean(x, axis=1)
    assert out_mean.shape == (B, D)
    assert jnp.allclose(out_mean, ref_mean, atol=1e-5, rtol=1e-5)

    # cls pooling
    out_cls = jax.block_until_ready(pooling(x, pool="cls"))
    assert out_cls.shape == (B, D)
    assert jnp.array_equal(out_cls, x[:, 0])

    # ragged sequence length (exercises cdiv grid + last-step static slice)
    S2 = 13
    x2 = jax.random.normal(jax.random.PRNGKey(1), (B, S2, D), dtype=jnp.float32)
    out2 = jax.block_until_ready(pooling(x2, pool="mean", ts=8))
    assert jnp.allclose(out2, jnp.mean(x2, axis=1), atol=1e-5, rtol=1e-5)

    # bf16 input: f32 accumulation across the sequence, cast only at the end
    xb = x.astype(jnp.bfloat16)
    outb = jax.block_until_ready(pooling(xb, pool="mean"))
    refb = jnp.mean(xb.astype(jnp.float32), axis=1).astype(jnp.bfloat16)
    assert jnp.allclose(
        outb.astype(jnp.float32), refb.astype(jnp.float32), atol=1e-2, rtol=1e-2
    )

    # larger batch: exercises the >=2 batch-block (megacore) tile cap
    B3, S3, D3 = 16, 24, 128
    x3 = jax.random.normal(jax.random.PRNGKey(2), (B3, S3, D3), dtype=jnp.float32)
    out3m = jax.block_until_ready(pooling(x3, pool="mean"))
    out3c = jax.block_until_ready(pooling(x3, pool="cls"))
    assert jnp.allclose(out3m, jnp.mean(x3, axis=1), atol=1e-5, rtol=1e-5)
    assert jnp.array_equal(out3c, x3[:, 0])

    print("KERNEL_OK")
</pallas_src>

<mosaic_0001>
module attributes {stable_mosaic.version = 11 : i64} {
  func.func @_mean_pool_kernel(%arg0: i32, %arg1: i32, %arg2: memref<2x8x32xf32, #tpu.memory_space<vmem>>, %arg3: memref<2x32xf32, #tpu.memory_space<vmem>>, %arg4: memref<2x32xf32, #tpu.memory_space<vmem>>) attributes {dimension_semantics = [#tpu.dimension_semantics<parallel>, #tpu.dimension_semantics<arbitrary>], iteration_bounds = array<i64: 1, 1>, scalar_prefetch = 0 : i64, scratch_operands = 1 : i64, tpu.core_type = #tpu.core_type<tc>, window_params = [{transform_indices = @transform_0, window_bounds = array<i64: 2, 8, 32>}, {transform_indices = @transform_1, window_bounds = array<i64: 2, 32>}]} {
    %c0_i32 = arith.constant 0 : i32
    %0 = arith.cmpi eq, %arg1, %c0_i32 : i32
    %1 = arith.extui %0 : i1 to i32
    %c0_i32_0 = arith.constant 0 : i32
    %2 = arith.cmpi ne, %1, %c0_i32_0 : i32
    scf.if %2 {
      %cst_9 = arith.constant 0.000000e+00 : f32
      %11 = vector.broadcast %cst_9 : f32 to vector<2x32xf32>
      %c0_10 = arith.constant 0 : index
      %c0_11 = arith.constant 0 : index
      %12 = vector.load %arg4[%c0_10, %c0_11] : memref<2x32xf32, #tpu.memory_space<vmem>>, vector<2x32xf32>
      tpu.vector_store %arg4[%c0_10, %c0_11], %11 {strides = array<i32>} : memref<2x32xf32, #tpu.memory_space<vmem>>, vector<2x32xf32>,
    } else {
    }
    %c0 = arith.constant 0 : index
    %c0_1 = arith.constant 0 : index
    %3 = vector.load %arg4[%c0, %c0_1] : memref<2x32xf32, #tpu.memory_space<vmem>>, vector<2x32xf32>
    %c0_2 = arith.constant 0 : index
    %c0_3 = arith.constant 0 : index
    %c0_4 = arith.constant 0 : index
    %4 = vector.load %arg2[%c0_2, %c0_3, %c0_4] : memref<2x8x32xf32, #tpu.memory_space<vmem>>, vector<2x8x32xf32>
    %cst = arith.constant dense<0.000000e+00> : vector<2x32xf32>
    %5 = vector.multi_reduction <add>, %4, %cst [1] : vector<2x8x32xf32> to vector<2x32xf32>
    %6 = arith.addf %3, %5 : vector<2x32xf32>
    %c0_5 = arith.constant 0 : index
    %c0_6 = arith.constant 0 : index
    %7 = vector.load %arg4[%c0_5, %c0_6] : memref<2x32xf32, #tpu.memory_space<vmem>>, vector<2x32xf32>
    tpu.vector_store %arg4[%c0_5, %c0_6], %6 {strides = array<i32>} : memref<2x32xf32, #tpu.memory_space<vmem>>, vector<2x32xf32>,
    %c0_i32_7 = arith.constant 0 : i32
    %8 = arith.cmpi eq, %arg1, %c0_i32_7 : i32
    %9 = arith.extui %8 : i1 to i32
    %c0_i32_8 = arith.constant 0 : i32
    %10 = arith.cmpi ne, %9, %c0_i32_8 : i32
    scf.if %10 {
      %c0_9 = arith.constant 0 : index
      %c0_10 = arith.constant 0 : index
      %11 = vector.load %arg4[%c0_9, %c0_10] : memref<2x32xf32, #tpu.memory_space<vmem>>, vector<2x32xf32>
      %cst_11 = arith.constant 1.250000e-01 : f32
      %12 = vector.broadcast %cst_11 : f32 to vector<2x32xf32>
      %13 = arith.mulf %11, %12 : vector<2x32xf32>
      %c0_12 = arith.constant 0 : index
      %c0_13 = arith.constant 0 : index
      %14 = vector.load %arg3[%c0_12, %c0_13] : memref<2x32xf32, #tpu.memory_space<vmem>>, vector<2x32xf32>
      tpu.vector_store %arg3[%c0_12, %c0_13], %13 {strides = array<i32>} : memref<2x32xf32, #tpu.memory_space<vmem>>, vector<2x32xf32>,
    } else {
    }
    return
  }
  func.func @transform_0(%arg0: i32, %arg1: i32) -> (i32, i32, i32) {
    %c0_i32 = arith.constant 0 : i32
    %c0_i32_0 = arith.constant 0 : i32
    return %arg0, %arg1, %c0_i32 : i32, i32, i32
  }
  func.func @transform_1(%arg0: i32, %arg1: i32) -> (i32, i32) {
    %c0_i32 = arith.constant 0 : i32
    %c0_i32_0 = arith.constant 0 : i32
    return %arg0, %c0_i32 : i32, i32
  }
}

</mosaic_0001>

<bundles_post_ra>
// kernel: tpu_custom_call.1
= control target key start
LH: loop header
LB: loop body
LE: loop exit
PB: predicated region body
PF: predicated region fallthrough
CT: control target
= control target key end

     0   :  { %6 = vsyncpa [#allocation4], 0  ;;  %s149_s0 = inlined_call_operand.hbm [shape: f32[2,8,32], index: 0, kind: input, shape index: {}]   ;;  %s150_s1 = inlined_call_operand.hbm [shape: f32[2,32], index: 1, kind: output, shape index: {}]  }
   0x1   :  { %7 = vsyncpa [#allocation5], 0  ;;  %s125_s6 = smov [#allocation3]  }
   0x2   :  { %s13_s7 = sshll.u32 %s125_s6, 4  ;;  %s14_s7 = int_to_ptr.vmem [resolvable:$true] %s13_s7 }
   0x3   :  { %s89_s8 = scalar_lea.vmem %s14_s7, 256  ;;  %p94_p1 = scmp.lt.s32.totalorder %s14_s7, %s14_s7 }
   0x4   :  { %p90_p0 = scmp.ne.s32.totalorder %s14_s7, %s89_s8  ;;  %p95_p2 = scmp.lt.s32.totalorder %s89_s8, %s89_s8 }
   0x6   :  { %p96_p3 = por %p95_p2, %p94_p1 }
   0x8   :  { %p97_p4 = pnand %p96_p3, %p90_p0 }
   0xa   :  { %100 = shalt.err (!%p97_p4)
}
   0xb   :  { %s126_s9 = smov 128   ;;  %s127_s10 = smov 8  }
   0xc   :  { %19 = dma.hbm_to_vmem [thread:$0]  %s149_s0, 256, %s14_s7, [#allocation4], %s126_s9, %s126_s9, %s127_s10  }
   0xd   :  { %121 = dma.done.wait [#allocation4], 256  }
   0xe   :  { %122 = vsyncadd [#allocation4], 4294967040  ;;  %vm27_vm0 = vcmask 254976   ;;  %v128_v0 = vmov 0.0   ;;  %vm32_vm1 = vcmask 261120   ;;  %v30_v1 = vld [vmem:[#allocation3] sm:$0xff] }
   0xf   :  { %28 = vst.msk [vmem:[#allocation2] sm:$0x3] %vm27_vm0, %v128_v0  ;;  %v31_v2 = vld [vmem:[#allocation3 + $0x8] sm:$0xff]  ;;  %v33_v3 = vsel %vm32_vm1, %v30_v1, 0.0  ;;  %vm49_vm2 = vcmask 1041409   ;;  %s129_s0 = smov [#allocation6]  }
  0x10   :  { %v40_v4 = vsel %vm32_vm1, %v31_v2, 0.0  ;;  %v34_v5 = vrot.slane %v33_v3, 4  ;;  %s67_s13 = sshll.u32 %s129_s0, 4  ;;  %s68_s13 = int_to_ptr.vmem [resolvable:$true] %s67_s13 }
  0x11   :  { %v41_v6 = vrot.slane %v40_v4, 4  ;;  %s101_s14 = scalar_lea.vmem %s68_s13, 32  ;;  %p106_p6 = scmp.lt.s32.totalorder %s68_s13, %s68_s13 }
  0x12   :  { %v35_v7 = vadd.f32 %v34_v5, %v33_v3  ;;  %p102_p5 = scmp.ne.s32.totalorder %s68_s13, %s101_s14  ;;  %p107_p7 = scmp.lt.s32.totalorder %s101_s14, %s101_s14 }
  0x13   :  { %v42_v8 = vadd.f32 %v41_v6, %v40_v4 }
  0x14   :  { %v36_v9 = vrot.slane %v35_v7, 2  ;;  %p108_p8 = por %p107_p7, %p106_p6 }
  0x15   :  { %v43_v10 = vrot.slane %v42_v8, 2 }
  0x16   :  { %v37_v11 = vadd.f32 %v36_v9, %v35_v7  ;;  %v29_v15 = vld [vmem:[#allocation2] sm:$0x3]  ;;  %p109_p9 = pnand %p108_p8, %p102_p5 }
  0x17   :  { %v44_v12 = vadd.f32 %v43_v10, %v42_v8 }
  0x18   :  { %v38_v13 = vrot.slane %v37_v11, 1 }
  0x19   :  { %v45_v14 = vrot.slane %v44_v12, 1 }
  0x1a   :  { %v39_v16 = vadd.f32 %v38_v13, %v37_v11 }
  0x1b   :  { %v46_v17 = vadd.f32 %v45_v14, %v44_v12 }
  0x1d   :  { %v50_v18 = vsel %vm49_vm2, %v46_v17, %v39_v16 }
  0x1e   :  { %v52_v19 = vadd.f32 %v50_v18, %v29_v15 }
  0x20   :  { %54 = vst.msk [vmem:[#allocation2] sm:$0x3] %vm27_vm0, %v52_v19 }
  0x27   :  { %v58_v20 = vld [vmem:[#allocation2] sm:$0x3] }
  0x28   :  { %v59_v21 = vmul.f32 0.125, %v58_v20 }
  0x2a   :  { %60 = vst.msk [vmem:[#allocation6] sm:$0x3] %vm27_vm0, %v59_v21 }
  0x2b   :  { %112 = shalt.err (!%p109_p9)
}
  0x2c   :  { %70 = dma.vmem_to_hbm [thread:$0]  %s68_s13, 32, %s150_s1, [#allocation5]  }
  0x2d   :  { %123 = dma.done.wait [#allocation5], 32  }
  0x2e   :  { %124 = vsyncadd [#allocation5], 4294967264 }
  0x2f   :  { %74 = vsyncpa [#allocation4], 1 }
  0x30   :  { %75 = vsyncpa [#allocation5], 1 }

</bundles_post_ra>
